<compile_context>
chip_gen: v7x
topology: tpu7x:2x2x1
jax: 0.10.0
libtpu: 0.0.40
codegen_flags: <defaults>
</compile_context>

<pallas_src>
import math
import functools

import jax
import jax.numpy as jnp
from jax import lax
from jax.experimental import pallas as pl
from jax.experimental.pallas import tpu as pltpu


def _rel_embed_kernel(x_ref, m_ref, w0_ref, b0_ref, w1_ref, b1_ref, out_ref,
                      *, agg_dtype):
    # x_ref : (Bb, N, Fin)   m_ref : (Bb, N, K)
    X = x_ref[...]
    Mf = m_ref[...]
    Bb, N, Fin = X.shape
    H = w0_ref.shape[1]
    Fout = w1_ref.shape[1]

    # --- similarity: softmax(relu(M @ M^T)) along last dim -------------------
    # contraction on the last axis of both operands -> MXU, no transpose.
    S = lax.dot_general(
        Mf, Mf,
        dimension_numbers=(((2,), (2,)), ((0,), (0,))),
        preferred_element_type=jnp.float32)                      # (Bb, N, N)
    S = jnp.maximum(S, 0.0)
    S = S - jnp.max(S, axis=-1, keepdims=True)
    E = jnp.exp(S)
    S = E * pl.reciprocal(jnp.sum(E, axis=-1, keepdims=True), approx=True)

    # Fold the identity into S once -> one aggregation matmul per layer.
    rows = lax.broadcasted_iota(jnp.int32, (N, N), 0)
    cols = lax.broadcasted_iota(jnp.int32, (N, N), 1)
    eye = jnp.where(rows == cols, 1.0, 0.0)                      # (N, N) f32
    S_plus = (S + eye).astype(agg_dtype)                         # I + S
    S_minus = (eye - S).astype(agg_dtype)                        # I - S

    # --- TGC layer 0: mode='add' -> Z0 = relu((I + S) X W0 + b0) -------------
    # Flatten (Bb, N) rows so the dense-weight matmul feeds Bb*N rows to MXU.
    XW0 = jnp.dot(X.reshape(Bb * N, Fin), w0_ref[...],
                  preferred_element_type=jnp.float32).reshape(Bb, N, H)
    Z0 = jnp.einsum('bnm,bmh->bnh', S_plus, XW0.astype(agg_dtype),
                    preferred_element_type=jnp.float32)
    Z0 = jnp.maximum(Z0 + b0_ref[...], 0.0)                      # (Bb, N, H)

    # --- TGC layer 1: mode='subtract' -> Z1 = (I - S) Z0 W1 + b1 -------------
    ZW1 = jnp.dot(Z0.reshape(Bb * N, H), w1_ref[...],
                  preferred_element_type=jnp.float32).reshape(Bb, N, Fout)
    Z1 = jnp.einsum('bnm,bmo->bno', S_minus, ZW1.astype(agg_dtype),
                    preferred_element_type=jnp.float32)
    out_ref[...] = (Z1 + b1_ref[...]).astype(out_ref.dtype)


def _vmem_bytes_estimate(b_blk, N, Fin, K, H, Fout):
    # double-buffered per-step I/O blocks
    io = 2 * b_blk * N * (Fin + K + Fout) * 4
    # grid-invariant weights/biases (conservatively assume double-buffered)
    w = 2 * (Fin * H + H + H * Fout + Fout) * 4
    # live in-kernel temps: S (f32) + S_plus/S_minus (bf16) + XW0/Z0/ZW1/Z1
    live = b_blk * (N * N * (4 + 2 + 2)
                    + N * (H * (4 + 2 + 4) + Fout * (4 + 2 + 4)))
    return io + w + live


def _pick_b_blk(B, N, Fin, K, H, Fout):
    # 1) fill MXU rows (aim for ~512 rows in the flattened dense matmuls);
    # 2) keep >= 2 grid steps so v7x's two TensorCores both get work;
    # 3) prefer a divisor of B (no padded-batch waste);
    # 4) cap by a rough VMEM budget (S dominates at large N).
    target = max(1, 512 // max(N, 1))
    if B >= 2:
        target = min(target, B // 2)
    target = max(1, min(target, B))
    b_blk = 1
    for d in range(1, target + 1):
        if B % d == 0:
            b_blk = d
    budget = 40 * 2 ** 20   # conservative across v5e/v6e/v7x scoped VMEM
    while b_blk > 1 and _vmem_bytes_estimate(b_blk, N, Fin, K, H, Fout) > budget:
        b_blk = max(1, b_blk // 2)
    return b_blk


def relational_embedding_layer(X, M, W0, b0, W1, b1, *, b_blk=None,
                               agg_dtype=jnp.bfloat16):
    B, N, Fin = X.shape
    _, _, K = M.shape
    H = W0.shape[1]
    Fout = W1.shape[1]

    if b_blk is None:
        b_blk = _pick_b_blk(B, N, Fin, K, H, Fout)

    Bp = -(-B // b_blk) * b_blk
    Xb, Mb = X, M
    if Bp != B:
        # zero-padded batches produce a uniform softmax (harmless) and are
        # sliced off below; the auto b_blk picker avoids this path.
        Xb = jnp.pad(X, ((0, Bp - B), (0, 0), (0, 0)))
        Mb = jnp.pad(M, ((0, Bp - B), (0, 0), (0, 0)))

    b0_2d = b0.reshape(1, H)
    b1_2d = b1.reshape(1, Fout)

    est = _vmem_bytes_estimate(b_blk, N, Fin, K, H, Fout)
    cp_kwargs = dict(dimension_semantics=("parallel",))
    if est > 12 * 2 ** 20:
        # Raise the scoped VMEM ceiling only when actually needed (v5e default
        # is 16 MiB); stay below v7x's 64 MiB physical VMEM.
        cp_kwargs["vmem_limit_bytes"] = int(min(est * 1.5, 56 * 2 ** 20))

    kernel = functools.partial(_rel_embed_kernel, agg_dtype=agg_dtype)

    out = pl.pallas_call(
        kernel,
        out_shape=jax.ShapeDtypeStruct((Bp, N, Fout), jnp.float32),
        grid_spec=pltpu.PrefetchScalarGridSpec(
            num_scalar_prefetch=0,
            grid=(Bp // b_blk,),
            in_specs=[
                pl.BlockSpec((b_blk, N, Fin), lambda b: (b, 0, 0)),
                pl.BlockSpec((b_blk, N, K), lambda b: (b, 0, 0)),
                # grid-invariant weights/biases: constant index_map keeps them
                # resident in VMEM across grid steps (tiny; double-buffer cost
                # is negligible so no explicit Buffered(1) requested).
                pl.BlockSpec((Fin, H), lambda b: (0, 0)),
                pl.BlockSpec((1, H), lambda b: (0, 0)),
                pl.BlockSpec((H, Fout), lambda b: (0, 0)),
                pl.BlockSpec((1, Fout), lambda b: (0, 0)),
            ],
            out_specs=pl.BlockSpec((b_blk, N, Fout), lambda b: (b, 0, 0)),
        ),
        compiler_params=pltpu.CompilerParams(**cp_kwargs),
    )(Xb, Mb, W0, b0_2d, W1, b1_2d)

    return out[:B] if Bp != B else out


def _xavier_uniform(key, fan_in, fan_out):
    limit = math.sqrt(6.0 / (fan_in + fan_out))
    return jax.random.uniform(key, (fan_in, fan_out), jnp.float32, -limit, limit)


def _reference(X, M, W0, b0, W1, b1):
    # pure-JAX f32 reference of the PyTorch forward pass (dropout = identity)
    S = jnp.einsum('bnk,bmk->bnm', M, M)
    S = jax.nn.relu(S)
    S = jax.nn.softmax(S, axis=-1)
    XW0 = jnp.einsum('bnf,fh->bnh', X, W0)
    Z0 = XW0 + jnp.einsum('bnm,bmh->bnh', S, XW0) + b0
    Z0 = jax.nn.relu(Z0)
    ZW1 = jnp.einsum('bnh,ho->bno', Z0, W1)
    Z1 = ZW1 - jnp.einsum('bnm,bmo->bno', S, ZW1) + b1
    return Z1


if __name__ == "__main__":
    B, N, Fin, K = 2, 16, 8, 4      # batch, num_stocks, in_features, num_factors
    H, Fout = 32, 8                 # hidden_features, out_features

    key = jax.random.PRNGKey(0)
    kx, km, kw0, kw1 = jax.random.split(key, 4)

    X = jax.random.normal(kx, (B, N, Fin), jnp.float32)
    M = jax.random.normal(km, (B, N, K), jnp.float32)

    # TGC layer 0: in=Fin, out=H ('add'); TGC layer 1: in=H, out=Fout ('subtract')
    W0 = _xavier_uniform(kw0, Fin, H)
    b0 = jnp.zeros((H,), jnp.float32)
    W1 = _xavier_uniform(kw1, H, Fout)
    b1 = jnp.zeros((Fout,), jnp.float32)

    out = relational_embedding_layer(X, M, W0, b0, W1, b1)
    out = jax.block_until_ready(out)

    ref = _reference(X, M, W0, b0, W1, b1)
    assert out.shape == (B, N, Fout)
    # bf16 aggregation operands + approx reciprocal => documented, slightly
    # looser tolerance (pass agg_dtype=jnp.float32 for tighter numerics).
    assert jnp.allclose(out, ref, atol=5e-2, rtol=5e-2), (
        float(jnp.max(jnp.abs(out - ref))))

    print("KERNEL_OK")
</pallas_src>

<mosaic_0001>
module attributes {stable_mosaic.version = 11 : i64} {
  func.func @_rel_embed_kernel(%arg0: i32, %arg1: memref<1x16x8xf32, #tpu.memory_space<vmem>>, %arg2: memref<1x16x4xf32, #tpu.memory_space<vmem>>, %arg3: memref<8x32xf32, #tpu.memory_space<vmem>>, %arg4: memref<1x32xf32, #tpu.memory_space<vmem>>, %arg5: memref<32x8xf32, #tpu.memory_space<vmem>>, %arg6: memref<1x8xf32, #tpu.memory_space<vmem>>, %arg7: memref<1x16x8xf32, #tpu.memory_space<vmem>>) attributes {dimension_semantics = [#tpu.dimension_semantics<parallel>], iteration_bounds = array<i64: 2>, scalar_prefetch = 0 : i64, scratch_operands = 0 : i64, tpu.core_type = #tpu.core_type<tc>, window_params = [{transform_indices = @transform_0, window_bounds = array<i64: 1, 16, 8>}, {transform_indices = @transform_1, window_bounds = array<i64: 1, 16, 4>}, {pipeline_mode = #tpu.pipeline_mode<synchronous>, transform_indices = @transform_2, window_bounds = array<i64: 8, 32>}, {pipeline_mode = #tpu.pipeline_mode<synchronous>, transform_indices = @transform_3, window_bounds = array<i64: 1, 32>}, {pipeline_mode = #tpu.pipeline_mode<synchronous>, transform_indices = @transform_4, window_bounds = array<i64: 32, 8>}, {pipeline_mode = #tpu.pipeline_mode<synchronous>, transform_indices = @transform_5, window_bounds = array<i64: 1, 8>}, {transform_indices = @transform_6, window_bounds = array<i64: 1, 16, 8>}]} {
    %c0 = arith.constant 0 : index
    %c0_0 = arith.constant 0 : index
    %c0_1 = arith.constant 0 : index
    %0 = vector.load %arg1[%c0, %c0_0, %c0_1] : memref<1x16x8xf32, #tpu.memory_space<vmem>>, vector<1x16x8xf32>
    %c0_2 = arith.constant 0 : index
    %c0_3 = arith.constant 0 : index
    %c0_4 = arith.constant 0 : index
    %1 = vector.load %arg2[%c0_2, %c0_3, %c0_4] : memref<1x16x4xf32, #tpu.memory_space<vmem>>, vector<1x16x4xf32>
    %cst = arith.constant dense<0.000000e+00> : vector<1x16x16xf32>
    %2 = tpu.matmul %1, %1, %cst {dimension_numbers = #tpu.dot_dimension_numbers<[2], [2], [1], [1], [0, 0, 0, 1, 1, 1], [0], [0]>} : vector<1x16x4xf32>, vector<1x16x4xf32>, vector<1x16x16xf32> -> vector<1x16x16xf32>
    %cst_5 = arith.constant 0.000000e+00 : f32
    %3 = vector.broadcast %cst_5 : f32 to vector<1x16x16xf32>
    %4 = arith.maximumf %2, %3 : vector<1x16x16xf32>
    %cst_6 = arith.constant dense<0xFF800000> : vector<1x16xf32>
    %5 = vector.multi_reduction <maximumf>, %4, %cst_6 [2] : vector<1x16x16xf32> to vector<1x16xf32>
    %6 = vector.shape_cast %5 : vector<1x16xf32> to vector<1x16x1xf32>
    %7 = vector.broadcast %6 : vector<1x16x1xf32> to vector<1x16x16xf32>
    %8 = arith.subf %4, %7 : vector<1x16x16xf32>
    %9 = math.exp %8 : vector<1x16x16xf32>
    %cst_7 = arith.constant dense<0.000000e+00> : vector<1x16xf32>
    %10 = vector.multi_reduction <add>, %9, %cst_7 [2] : vector<1x16x16xf32> to vector<1x16xf32>
    %11 = vector.shape_cast %10 : vector<1x16xf32> to vector<1x16x1xf32>
    %12 = tpu.reciprocal %11 {approx = true} : vector<1x16x1xf32> -> vector<1x16x1xf32>
    %13 = vector.broadcast %12 : vector<1x16x1xf32> to vector<1x16x16xf32>
    %14 = arith.mulf %9, %13 : vector<1x16x16xf32>
    %15 = tpu.iota {dimensions = array<i32: 0>} : vector<16x16xi32>
    %16 = tpu.iota {dimensions = array<i32: 1>} : vector<16x16xi32>
    %17 = arith.cmpi eq, %15, %16 : vector<16x16xi32>
    %cst_8 = arith.constant 1.000000e+00 : f32
    %cst_9 = arith.constant 0.000000e+00 : f32
    %18 = vector.broadcast %cst_8 : f32 to vector<16x16xf32>
    %19 = vector.broadcast %cst_9 : f32 to vector<16x16xf32>
    %20 = arith.select %17, %18, %19 : vector<16x16xi1>, vector<16x16xf32>
    %21 = vector.shape_cast %20 : vector<16x16xf32> to vector<1x16x16xf32>
    %22 = arith.addf %14, %21 : vector<1x16x16xf32>
    %23 = arith.truncf %22 : vector<1x16x16xf32> to vector<1x16x16xbf16>
    %24 = vector.shape_cast %20 : vector<16x16xf32> to vector<1x16x16xf32>
    %25 = arith.subf %24, %14 : vector<1x16x16xf32>
    %26 = arith.truncf %25 : vector<1x16x16xf32> to vector<1x16x16xbf16>
    %27 = vector.shape_cast %0 : vector<1x16x8xf32> to vector<16x8xf32>
    %c0_10 = arith.constant 0 : index
    %c0_11 = arith.constant 0 : index
    %28 = vector.load %arg3[%c0_10, %c0_11] : memref<8x32xf32, #tpu.memory_space<vmem>>, vector<8x32xf32>
    %cst_12 = arith.constant dense<0.000000e+00> : vector<16x32xf32>
    %29 = tpu.matmul %27, %28, %cst_12 {dimension_numbers = #tpu.dot_dimension_numbers<[1], [0], [0], [1], [0, 0, 1, 1], [], []>} : vector<16x8xf32>, vector<8x32xf32>, vector<16x32xf32> -> vector<16x32xf32>
    %30 = vector.shape_cast %29 : vector<16x32xf32> to vector<1x16x32xf32>
    %31 = arith.truncf %30 : vector<1x16x32xf32> to vector<1x16x32xbf16>
    "tpu.trace_start"() <{level = 10 : i32, message = "bnm,bmh->bnh"}> : () -> ()
    %cst_13 = arith.constant dense<0.000000e+00> : vector<1x16x32xf32>
    %32 = tpu.matmul %23, %31, %cst_13 {dimension_numbers = #tpu.dot_dimension_numbers<[2], [1], [1], [2], [0, 0, 0, 1, 1, 2], [0], [0]>} : vector<1x16x16xbf16>, vector<1x16x32xbf16>, vector<1x16x32xf32> -> vector<1x16x32xf32>
    "tpu.trace_stop"() : () -> ()
    %c0_14 = arith.constant 0 : index
    %c0_15 = arith.constant 0 : index
    %33 = vector.load %arg4[%c0_14, %c0_15] : memref<1x32xf32, #tpu.memory_space<vmem>>, vector<1x32xf32>
    %34 = vector.shape_cast %33 : vector<1x32xf32> to vector<1x1x32xf32>
    %35 = vector.broadcast %34 : vector<1x1x32xf32> to vector<1x16x32xf32>
    %36 = arith.addf %32, %35 : vector<1x16x32xf32>
    %cst_16 = arith.constant 0.000000e+00 : f32
    %37 = vector.broadcast %cst_16 : f32 to vector<1x16x32xf32>
    %38 = arith.maximumf %36, %37 : vector<1x16x32xf32>
    %39 = vector.shape_cast %38 : vector<1x16x32xf32> to vector<16x32xf32>
    %c0_17 = arith.constant 0 : index
    %c0_18 = arith.constant 0 : index
    %40 = vector.load %arg5[%c0_17, %c0_18] : memref<32x8xf32, #tpu.memory_space<vmem>>, vector<32x8xf32>
    %cst_19 = arith.constant dense<0.000000e+00> : vector<16x8xf32>
    %41 = tpu.matmul %39, %40, %cst_19 {dimension_numbers = #tpu.dot_dimension_numbers<[1], [0], [0], [1], [0, 0, 1, 1], [], []>} : vector<16x32xf32>, vector<32x8xf32>, vector<16x8xf32> -> vector<16x8xf32>
    %42 = vector.shape_cast %41 : vector<16x8xf32> to vector<1x16x8xf32>
    %43 = arith.truncf %42 : vector<1x16x8xf32> to vector<1x16x8xbf16>
    "tpu.trace_start"() <{level = 10 : i32, message = "bnm,bmo->bno"}> : () -> ()
    %cst_20 = arith.constant dense<0.000000e+00> : vector<1x16x8xf32>
    %44 = tpu.matmul %26, %43, %cst_20 {dimension_numbers = #tpu.dot_dimension_numbers<[2], [1], [1], [2], [0, 0, 0, 1, 1, 2], [0], [0]>} : vector<1x16x16xbf16>, vector<1x16x8xbf16>, vector<1x16x8xf32> -> vector<1x16x8xf32>
    "tpu.trace_stop"() : () -> ()
    %c0_21 = arith.constant 0 : index
    %c0_22 = arith.constant 0 : index
    %45 = vector.load %arg6[%c0_21, %c0_22] : memref<1x8xf32, #tpu.memory_space<vmem>>, vector<1x8xf32>
    %46 = vector.shape_cast %45 : vector<1x8xf32> to vector<1x1x8xf32>
    %47 = vector.broadcast %46 : vector<1x1x8xf32> to vector<1x16x8xf32>
    %48 = arith.addf %44, %47 : vector<1x16x8xf32>
    %c0_23 = arith.constant 0 : index
    %c0_24 = arith.constant 0 : index
    %c0_25 = arith.constant 0 : index
    %49 = vector.load %arg7[%c0_23, %c0_24, %c0_25] : memref<1x16x8xf32, #tpu.memory_space<vmem>>, vector<1x16x8xf32>
    tpu.vector_store %arg7[%c0_23, %c0_24, %c0_25], %48 {strides = array<i32>} : memref<1x16x8xf32, #tpu.memory_space<vmem>>, vector<1x16x8xf32>,
    return
  }
  func.func @transform_0(%arg0: i32) -> (i32, i32, i32) {
    %c0_i32 = arith.constant 0 : i32
    %c0_i32_0 = arith.constant 0 : i32
    %c0_i32_1 = arith.constant 0 : i32
    return %arg0, %c0_i32, %c0_i32_0 : i32, i32, i32
  }
  func.func @transform_1(%arg0: i32) -> (i32, i32, i32) {
    %c0_i32 = arith.constant 0 : i32
    %c0_i32_0 = arith.constant 0 : i32
    %c0_i32_1 = arith.constant 0 : i32
    return %arg0, %c0_i32, %c0_i32_0 : i32, i32, i32
  }
  func.func @transform_2(%arg0: i32) -> (i32, i32) {
    %c0_i32 = arith.constant 0 : i32
    %c0_i32_0 = arith.constant 0 : i32
    %c0_i32_1 = arith.constant 0 : i32
    return %c0_i32, %c0_i32_0 : i32, i32
  }
  func.func @transform_3(%arg0: i32) -> (i32, i32) {
    %c0_i32 = arith.constant 0 : i32
    %c0_i32_0 = arith.constant 0 : i32
    %c0_i32_1 = arith.constant 0 : i32
    return %c0_i32, %c0_i32_0 : i32, i32
  }
  func.func @transform_4(%arg0: i32) -> (i32, i32) {
    %c0_i32 = arith.constant 0 : i32
    %c0_i32_0 = arith.constant 0 : i32
    %c0_i32_1 = arith.constant 0 : i32
    return %c0_i32, %c0_i32_0 : i32, i32
  }
  func.func @transform_5(%arg0: i32) -> (i32, i32) {
    %c0_i32 = arith.constant 0 : i32
    %c0_i32_0 = arith.constant 0 : i32
    %c0_i32_1 = arith.constant 0 : i32
    return %c0_i32, %c0_i32_0 : i32, i32
  }
  func.func @transform_6(%arg0: i32) -> (i32, i32, i32) {
    %c0_i32 = arith.constant 0 : i32
    %c0_i32_0 = arith.constant 0 : i32
    %c0_i32_1 = arith.constant 0 : i32
    return %arg0, %c0_i32, %c0_i32_0 : i32, i32, i32
  }
}

</mosaic_0001>

<bundles_post_ra>
// kernel: tpu_custom_call.1
= control target key start
LH: loop header
LB: loop body
LE: loop exit
PB: predicated region body
PF: predicated region fallthrough
CT: control target
= control target key end

     0   :  { %s900_s21 = smov 0   ;;  %s956_s0 = inlined_call_operand.vmem [shape: f32[2,16,8], index: 0, kind: input, shape index: {}]   ;;  %s957_s1 = inlined_call_operand.vmem [shape: f32[2,16,4], index: 1, kind: input, shape index: {}]   ;;  %s958_s2 = inlined_call_operand.vmem [shape: f32[8,32], index: 2, kind: input, shape index: {}]   ;;  %s959_s3 = inlined_call_operand.vmem [shape: f32[1,32], index: 3, kind: input, shape index: {}]   ;;  %s960_s4 = inlined_call_operand.vmem [shape: f32[32,8], index: 4, kind: input, shape index: {}]   ;;  %s961_s5 = inlined_call_operand.vmem [shape: f32[1,8], index: 5, kind: input, shape index: {}]   ;;  %s962_s6 = inlined_call_operand.vmem [shape: f32[2,16,8], index: 6, kind: output, shape index: {}]  }
   0x1 LB: > { %s743_s22 = sadd.s32 4294967295, %s861_s21   ;;  %p747_p0 = scmp.ge.s32.totalorder %s861_s21, 1  ;;  %s861_s21 = sphi %s900_s21, %s16_s21  }
   0x2   : > { %p222_p1 = scmp.lt.s32.totalorder %s861_s21, 3 }
   0x4   : > { %p223_p2 = pnand %p747_p0, %p222_p1 }
   0x5   : > { %p257_p3 = scmp.lt.s32.totalorder (!%p223_p2), %s743_s22, 1  ;;  %vm277_vm0 = vcmask (!%p223_p2), 31744   ;;  %v399_v3 = vld [vmem:[%s958_s2] sm:$0xff] (!%p223_p2)  ;;  %vm400_vm2 = vcmask (!%p223_p2), 64512   ;;  %vm361_vm3 = vcmask (!%p223_p2), 130048   ;;  %v863_v22 = vmov (!%p223_p2), 0.0  }
   0x6   : > { %226 = sbr.rel (%p223_p2) target bundleno = 1217 (0x4c1), region = 44  ;;  %vm824_vm1 = vmpackc.low (!%p223_p2), %vm277_vm0, %vm277_vm0  ;;  %795 = vmatprep.subr.mxu1 (!%p223_p2), %v399_v3  ;;  %vm864_vm4 = vmmov (!%p223_p2), 0   ;;  %v536_v26 = vld [vmem:[%s960_s4] sm:$0xff] (!%p223_p2)  ;;  %v537_v27 = vld [vmem:[%s960_s4 + $0x8] sm:$0xff] (!%p223_p2)  ;;  %v384_v30 = vlaneseq (!%p223_p2)  ;;  %vm540_vm7 = vcmask (!%p223_p2), 261120  }
   0x7   : > { %796 = vmatpush3.msra.mxu1 (!%p223_p2), %v399_v3  ;;  %v829_v28 = vpack.c.bf16 (!%p223_p2), %v537_v27, %v536_v26  ;;  %v538_v47 = vld [vmem:[%s960_s4 + $0x10] sm:$0xff] (!%p223_p2)  ;;  %v539_v48 = vld [vmem:[%s960_s4 + $0x18] sm:$0xff] (!%p223_p2)  ;;  %v760_v50 = vld [vmem:[%s959_s3] ss:$0 sm:$0xff] (!%p223_p2) }
   0x8   : > { %800 = vmatprep.subr.bf16.mxu1 (!%p223_p2), %v863_v22  ;;  %v385_v32 = vshrl.u32 (!%p223_p2), %v384_v30, 7  ;;  %v388_v33 = vand.u32 (!%p223_p2), 127, %v384_v30  ;;  %v833_v49 = vpack.c.bf16 (!%p223_p2), %v539_v48, %v538_v47  ;;  %v764_v62 = vld [vmem:[%s961_s5] ss:$0 sm:$0xff] (!%p223_p2) }
   0xa   : > { %v386_v34 = vadd.s32 (!%p223_p2), 8, %v385_v32  ;;  %vm389_vm5 = vcmp.eq.s32.totalorder (!%p223_p2), %v385_v32, %v388_v33 }
   0xb   : > { %v391_v36 = vsel (!%p223_p2), %vm389_vm5, 1.0, %v863_v22 }
   0xc   : > { %vm390_vm6 = vcmp.eq.s32.totalorder (!%p223_p2), %v386_v34, %v388_v33 }
   0xd   : > { %s964_s22 = smov (!%p257_p3, %s743_s22), 1  ;;  %v392_v40 = vsel %vm390_vm6, 1.0, %v863_v22 }
   0xe   : > { %s908_s23 = sshll.u32 %s964_s22, 4 }
   0xf   : > { %s266_s26 = scalar_lea.vmem %s957_s1, %s908_s23  ;;  %s261_s7 = scalar_lea.vmem %s956_s0, %s908_s23 }
  0x10   : > { %v275_v0 = vld [vmem:[%s266_s26] sm:$0xff]  ;;  %v276_v1 = vld [vmem:[%s266_s26 + $0x8] sm:$0xff]  ;;  %s271_s24 = scalar_lea.vmem %s962_s6, %s908_s23 }
  0x11   : > { %v823_v2 = vpack.c.bf16 %v276_v1, %v275_v0  ;;  %792 = vmatprep.mubr.msk.f32.mxu0 %vm277_vm0, %v275_v0  ;;  %v273_v4 = vld [vmem:[%s261_s7] sm:$0xff]  ;;  %v274_v5 = vld [vmem:[%s261_s7 + $0x8] sm:$0xff] }
  0x12   : > { %797 = vmatprep.mubr.msk.f32.mxu1 %vm400_vm2, %v273_v4 }
  0x13   : > { %825 = vmatprep.subr.msk.bf16.mxu0 %vm824_vm1, %v823_v2  ;;  %798 = vmatmul.mubr.msk.f32.vlgmr.msra.gmra.mrb[0].mxu1 %vm400_vm2, %v274_v5 }
  0x14   : > { %828 = vmatpush3.bf16.xpose.msk.msra.mxu0 %vm824_vm1, %v823_v2  ;;  %802 = vmatprep.mubr.msk.bf16.mxu1 %vm864_vm4, %v863_v22 }
  0x15   : > { %817 = vmatprep.subr.bf16.mxu0 %v863_v22 }
  0x1b   : > { %793 = vmatmul.mubr.msk.f32.vlgmr.msra.gmra.mrb[0].mxu0 %vm277_vm0, %v276_v1 }
  0x1c   : > { %819 = vmatprep.mubr.msk.bf16.mxu0 %vm864_vm4, %v863_v22 }
  0xe6   : > { %v799_v23 = vpop.f32.mrb[0].mxu1 }
  0xe7   : > { %v473_v24 = vpop.f32.mrb[1].mxu1 }
  0xe8   : > { %v482_v25 = vpack.c.bf16 %v799_v23, %v473_v24 }
  0xea   : > { %801 = vmatpush3.bf16.msra.mxu1 %v482_v25 }
  0xeb   : > { %830 = vmatprep.subr.bf16.mxu1 %v829_v28 }
  0xee   : > { %v794_v6 = vpop.f32.mrb[0].mxu0 }
  0xef   : > { %v350_v7 = vpop.f32.mrb[1].mxu0  ;;  %v360_v9 = vmax.f32 %v794_v6, 0.0 }
  0xf0   : > { %v359_v8 = vmax.f32 %v350_v7, 0.0 }
  0xf1   : > { %v365_v11 = vsel %vm361_vm3, %v360_v9, -inf }
  0xf2   : > { %v362_v10 = vsel %vm361_vm3, %v359_v8, -inf }
  0xf3   : > { %363 = vmax.xlane.f32.xlu0 %v362_v10 }
  0xf7   : > { %366 = vmax.xlane.f32.xlu0 %v365_v11 }
 0x180   : > { %v364_v12 = vpop.xlane.xlu0 %363 }
 0x181   : > { %v368_v13 = vsub.f32 %v359_v8, %v364_v12 }
 0x183   : > { %v370_v14 = vmul.f32 1.442695, %v368_v13 }
 0x184   : > { %v367_v15 = vpop.xlane.xlu0 %366 }
 0x185   : > { %847 = vpow2.f32 %v370_v14  ;;  %v369_v16 = vsub.f32 %v360_v9, %v367_v15 }
 0x187   : > { %v372_v17 = vmul.f32 1.442695, %v369_v16 }
 0x189   : > { %849 = vpow2.f32 %v372_v17 }
 0x18f   : > { %v848_v18 = vpop.eup %847 }
 0x190   : > { %v374_v19 = vsel %vm361_vm3, %v848_v18, 0.0 }
 0x191   : > { %375 = vadd.xlane.f32.xlu1 %v374_v19 }
 0x193   : > { %v850_v20 = vpop.eup %849 }
 0x194   : > { %v377_v21 = vsel %vm361_vm3, %v850_v20, 0.0 }
 0x195   : > { %378 = vadd.xlane.f32.xlu1 %v377_v21 }
 0x21e   : > { %v376_v29 = vpop.xlane.xlu1 %375 }
 0x21f   : > { %851 = vrcp.f32 %v376_v29 }
 0x222   : > { %v379_v31 = vpop.xlane.xlu1 %378 }
 0x223   : > { %853 = vrcp.f32 %v379_v31 }
 0x229   : > { %v852_v35 = vpop.eup %851 }
 0x22a   : > { %v382_v37 = vmul.f32 %v852_v35, %v848_v18 }
 0x22c   : > { %v396_v38 = vsub.f32 %v391_v36, %v382_v37  ;;  %v393_v42 = vadd.f32 %v391_v36, %v382_v37 }
 0x22d   : > { %v854_v39 = vpop.eup %853 }
 0x22e   : > { %v383_v41 = vmul.f32 %v854_v39, %v850_v20 }
 0x230   : > { %v394_v43 = vadd.f32 %v392_v40, %v383_v41  ;;  %v397_v44 = vsub.f32 %v392_v40, %v383_v41 }
 0x232   : > { %v395_v45 = vpack.c.bf16 %v394_v43, %v393_v42  ;;  %v398_v46 = vpack.c.bf16 %v397_v44, %v396_v38 }
 0x234   : > { %803 = vmatmul.mubr.msk.bf16.vlgmr.msra.gmra.mrb[4].mxu1 %vm361_vm3, %v395_v45 }
 0x235   : > { %832 = vmatpush3.bf16.msra.mxu1 %v829_v28 }
 0x236   : > { %834 = vmatprep.subr.bf16.mxu1 %v833_v49 }
 0x239   : > { %836 = vmatpush3.bf16.msra.mxu1 %v833_v49 }
 0x307   : > { %v527_v51 = vpop.f32.mrb[4].mxu1 }
 0x308   : > { %v528_v52 = vadd.f32 %v760_v50, %v527_v51  ;;  %v804_v53 = vpop.f32.mrb[5].mxu1 }
 0x309   : > { %v530_v54 = vpop.f32.mrb[6].mxu1 }
 0x30a   : > { %v534_v55 = vmax.f32 %v528_v52, 0.0  ;;  %v531_v56 = vadd.f32 %v760_v50, %v530_v54  ;;  %v805_v57 = vpop.f32.mrb[7].mxu1 }
 0x30c   : > { %v535_v58 = vmax.f32 %v531_v56, 0.0  ;;  %814 = vmatprep.mubr.msk.f32.mxu1 %vm540_vm7, %v534_v55 }
 0x30e   : > { %815 = vmatmul.mubr.msk.f32.vlgmr.msra.gmra.mrb[2].mxu1 %vm540_vm7, %v535_v58 }
 0x3e1   : > { %v816_v59 = vpop.f32.mrb[2].mxu1 }
 0x3e2   : > { %v613_v60 = vpop.f32.mrb[3].mxu1 }
 0x3e3   : > { %v622_v61 = vpack.c.bf16 %v816_v59, %v613_v60 }
 0x3e5   : > { %818 = vmatpush3.bf16.msra.mxu0 %v622_v61 }
 0x3e8   : > { %820 = vmatmul.mubr.msk.bf16.vlgmr.msra.gmra.mrb[4].mxu0 %vm361_vm3, %v398_v46 }
 0x4bb   : > { %v667_v63 = vpop.f32.mrb[4].mxu0 }
 0x4bc   : > { %v668_v0 = vadd.f32 %v764_v62, %v667_v63  ;;  %v821_v1 = vpop.f32.mrb[5].mxu0 }
 0x4bd   : > { %v670_v2 = vpop.f32.mrb[6].mxu0 }
 0x4be   : > { %674 = vst.msk [vmem:[%s271_s24] sm:$0xff] %vm400_vm2, %v668_v0  ;;  %v671_v3 = vadd.f32 %v764_v62, %v670_v2  ;;  %v822_v4 = vpop.f32.mrb[7].mxu0 }
 0x4c0   : > { %675 = vst.msk [vmem:[%s271_s24 + $0x8] sm:$0xff] %vm400_vm2, %v671_v3 }
 0x4c1 PF: > { %s16_s21 = sadd.s32 1, %s861_s21  }
 0x4c2   : > { %p13_p4 = scmp.ge.s32.totalorder %s16_s21, 4  }
 0x4c4   :  { %15 = sbr.rel (!%p13_p4) target bundleno = 1 (0x1), region = 77 }

</bundles_post_ra>
